<compile_context>
chip_gen: v5e
topology: v5e:2x2
jax: 0.10.0
libtpu: 0.0.40
codegen_flags: <defaults>
</compile_context>

<pallas_src>
import jax
import jax.numpy as jnp
import numpy as np
from jax.experimental import pallas as pl
from jax.experimental.pallas import tpu as pltpu

LANES = 128


def _round_up(x, m):
    return (x + m - 1) // m * m


def _pick_row_tile(n):
    # Largest "nice" row tile that divides N (keeps the grid short; each grid
    # step costs ~0.35 us of pipeline overhead).
    for cand in (512, 256, 128, 64, 32, 16, 8):
        if n % cand == 0:
            return cand
    return n  # small / odd N: single grid step over the full array


def _predictor_kernel(x_ref, w1_ref, b1_ref, w2_ref, b2_ref, out_ref):
    x = x_ref[...]                                          # [tn, Hp]  (bf16)

    # linear1 + ReLU  (MXU matmul, f32 accumulation; bias/ReLU in f32)
    h = jnp.dot(x, w1_ref[...], preferred_element_type=jnp.float32) + b1_ref[...]
    h = jnp.maximum(h, 0.0)

    # linear2
    logits = (jnp.dot(h.astype(w2_ref.dtype), w2_ref[...],
                      preferred_element_type=jnp.float32) + b2_ref[...])

    # Numerically stable softmax over the class (lane) dim.  Padded classes
    # carry a -1e30 bias -> exp == 0, so normalization covers real classes only.
    m = jnp.max(logits, axis=-1, keepdims=True)
    e = jnp.exp(logits - m)
    s = jnp.sum(e, axis=-1, keepdims=True)
    out_ref[...] = (e / s).astype(out_ref.dtype)


def next_document_category_predictor(x, w1, b1, w2, b2, *,
                                     row_tile=None,
                                     compute_dtype=jnp.bfloat16):
    """Fused forward pass.

    x  : [N, H]        document encodings
    w1 : [H, H//2]     linear weight, stored pre-transposed as [in, out]
    b1 : [H//2]
    w2 : [H//2, C+1]   linear2 weight, [in, out]
    b2 : [C+1]
    returns softmax probabilities, [N, C+1] float32.
    """
    N, H = x.shape
    K = w1.shape[1]
    C = w2.shape[1]
    assert w1.shape == (H, K) and b1.shape == (K,)
    assert w2.shape == (K, C) and b2.shape == (C,)

    Hp = _round_up(H, LANES)
    Kp = _round_up(K, LANES)
    Cp = _round_up(C, LANES)

    # Lane-dense padding (exact): zero input columns / weight rows contribute 0,
    # relu(0) = 0, and padded output classes get probability exactly 0.
    xp = jnp.pad(x, ((0, 0), (0, Hp - H))).astype(compute_dtype)
    w1p = jnp.pad(w1, ((0, Hp - H), (0, Kp - K))).astype(compute_dtype)
    b1p = jnp.pad(b1, (0, Kp - K)).reshape(1, Kp).astype(jnp.float32)
    w2p = jnp.pad(w2, ((0, Kp - K), (0, Cp - C))).astype(compute_dtype)
    b2p = jnp.pad(b2, (0, Cp - C),
                  constant_values=-1e30).reshape(1, Cp).astype(jnp.float32)

    tn = row_tile if row_tile is not None else _pick_row_tile(N)
    assert N % tn == 0
    grid = (N // tn,)

    row_spec = pl.BlockSpec((tn, Hp), lambda i: (i, 0))
    out_spec = pl.BlockSpec((tn, Cp), lambda i: (i, 0))
    # Constant index maps -> weights/biases stay resident in VMEM across the grid.
    # TODO(synk): at production H, add pipeline_mode=pl.Buffered(1) to these specs
    # and set vmem_limit_bytes (v7x has only 64 MiB VMEM) so the dead second
    # buffer of each resident weight does not eat the row-tile budget.
    w1_spec = pl.BlockSpec((Hp, Kp), lambda i: (0, 0))
    b1_spec = pl.BlockSpec((1, Kp), lambda i: (0, 0))
    w2_spec = pl.BlockSpec((Kp, Cp), lambda i: (0, 0))
    b2_spec = pl.BlockSpec((1, Cp), lambda i: (0, 0))

    bytes_accessed = (xp.size * xp.dtype.itemsize
                      + w1p.size * w1p.dtype.itemsize
                      + b1p.size * b1p.dtype.itemsize
                      + w2p.size * w2p.dtype.itemsize
                      + b2p.size * b2p.dtype.itemsize
                      + N * Cp * 4)
    cost = pl.CostEstimate(
        flops=2 * N * Hp * Kp + 2 * N * Kp * Cp,
        transcendentals=N * Cp,
        bytes_accessed=bytes_accessed)

    out_padded = pl.pallas_call(
        _predictor_kernel,
        out_shape=jax.ShapeDtypeStruct((N, Cp), jnp.float32),
        grid_spec=pltpu.PrefetchScalarGridSpec(
            num_scalar_prefetch=0,
            grid=grid,
            in_specs=[row_spec, w1_spec, b1_spec, w2_spec, b2_spec],
            out_specs=out_spec,
        ),
        compiler_params=pltpu.CompilerParams(
            dimension_semantics=("parallel",)),
        cost_estimate=cost,
    )(xp, w1p, b1p, w2p, b2p)

    return out_padded[:, :C]


def reference(x, w1, b1, w2, b2):
    h = jnp.maximum(x @ w1 + b1, 0.0)
    logits = h @ w2 + b2
    return jax.nn.softmax(logits, axis=1)


if __name__ == "__main__":
    # Small config consistent with the module: batch of 16 document encodings,
    # hidden_size=32, num_categories=10 (output dim = num_categories + 1 = 11).
    batch = 16
    hidden_size = 32
    num_categories = 10
    Hh = hidden_size // 2
    C = num_categories + 1

    key = jax.random.PRNGKey(0)
    k = jax.random.split(key, 5)

    x = jax.random.normal(k[0], (batch, hidden_size), dtype=jnp.float32)

    # Deterministic Linear params (stored pre-transposed as [in, out], which is
    # equivalent to torch's y = x @ W.T + b).
    s1 = 1.0 / np.sqrt(hidden_size)
    s2 = 1.0 / np.sqrt(Hh)
    w1 = jax.random.uniform(k[1], (hidden_size, Hh), jnp.float32, -s1, s1)
    b1 = jax.random.uniform(k[2], (Hh,), jnp.float32, -s1, s1)
    w2 = jax.random.uniform(k[3], (Hh, C), jnp.float32, -s2, s2)
    b2 = jax.random.uniform(k[4], (C,), jnp.float32, -s2, s2)

    out = next_document_category_predictor(x, w1, b1, w2, b2)
    out = jax.block_until_ready(out)

    ref = reference(x, w1, b1, w2, b2)
    np.testing.assert_allclose(np.asarray(out), np.asarray(ref),
                               rtol=2e-2, atol=2e-2)
    np.testing.assert_allclose(np.asarray(out).sum(axis=1),
                               np.ones(batch), rtol=1e-3, atol=1e-3)
    print("KERNEL_OK")
</pallas_src>

<mosaic_0001>
module attributes {stable_mosaic.version = 11 : i64} {
  func.func @_predictor_kernel(%arg0: i32, %arg1: memref<16x128xbf16, #tpu.memory_space<vmem>>, %arg2: memref<128x128xbf16, #tpu.memory_space<vmem>>, %arg3: memref<1x128xf32, #tpu.memory_space<vmem>>, %arg4: memref<128x128xbf16, #tpu.memory_space<vmem>>, %arg5: memref<1x128xf32, #tpu.memory_space<vmem>>, %arg6: memref<16x128xf32, #tpu.memory_space<vmem>>) attributes {dimension_semantics = [#tpu.dimension_semantics<parallel>], iteration_bounds = array<i64: 1>, scalar_prefetch = 0 : i64, scratch_operands = 0 : i64, tpu.core_type = #tpu.core_type<tc>, window_params = [{transform_indices = @transform_0, window_bounds = array<i64: 16, 128>}, {pipeline_mode = #tpu.pipeline_mode<synchronous>, transform_indices = @transform_1, window_bounds = array<i64: 128, 128>}, {pipeline_mode = #tpu.pipeline_mode<synchronous>, transform_indices = @transform_2, window_bounds = array<i64: 1, 128>}, {pipeline_mode = #tpu.pipeline_mode<synchronous>, transform_indices = @transform_3, window_bounds = array<i64: 128, 128>}, {pipeline_mode = #tpu.pipeline_mode<synchronous>, transform_indices = @transform_4, window_bounds = array<i64: 1, 128>}, {transform_indices = @transform_5, window_bounds = array<i64: 16, 128>}]} {
    %c0 = arith.constant 0 : index
    %c0_0 = arith.constant 0 : index
    %0 = vector.load %arg1[%c0, %c0_0] : memref<16x128xbf16, #tpu.memory_space<vmem>>, vector<16x128xbf16>
    %c0_1 = arith.constant 0 : index
    %c0_2 = arith.constant 0 : index
    %1 = vector.load %arg2[%c0_1, %c0_2] : memref<128x128xbf16, #tpu.memory_space<vmem>>, vector<128x128xbf16>
    %cst = arith.constant dense<0.000000e+00> : vector<16x128xf32>
    %2 = tpu.matmul %0, %1, %cst {dimension_numbers = #tpu.dot_dimension_numbers<[1], [0], [0], [1], [0, 0, 1, 1], [], []>} : vector<16x128xbf16>, vector<128x128xbf16>, vector<16x128xf32> -> vector<16x128xf32>
    %c0_3 = arith.constant 0 : index
    %c0_4 = arith.constant 0 : index
    %3 = vector.load %arg3[%c0_3, %c0_4] : memref<1x128xf32, #tpu.memory_space<vmem>>, vector<1x128xf32>
    %4 = vector.broadcast %3 : vector<1x128xf32> to vector<16x128xf32>
    %5 = arith.addf %2, %4 : vector<16x128xf32>
    %cst_5 = arith.constant 0.000000e+00 : f32
    %6 = vector.broadcast %cst_5 : f32 to vector<16x128xf32>
    %7 = arith.maximumf %5, %6 : vector<16x128xf32>
    %8 = arith.truncf %7 : vector<16x128xf32> to vector<16x128xbf16>
    %c0_6 = arith.constant 0 : index
    %c0_7 = arith.constant 0 : index
    %9 = vector.load %arg4[%c0_6, %c0_7] : memref<128x128xbf16, #tpu.memory_space<vmem>>, vector<128x128xbf16>
    %cst_8 = arith.constant dense<0.000000e+00> : vector<16x128xf32>
    %10 = tpu.matmul %8, %9, %cst_8 {dimension_numbers = #tpu.dot_dimension_numbers<[1], [0], [0], [1], [0, 0, 1, 1], [], []>} : vector<16x128xbf16>, vector<128x128xbf16>, vector<16x128xf32> -> vector<16x128xf32>
    %c0_9 = arith.constant 0 : index
    %c0_10 = arith.constant 0 : index
    %11 = vector.load %arg5[%c0_9, %c0_10] : memref<1x128xf32, #tpu.memory_space<vmem>>, vector<1x128xf32>
    %12 = vector.broadcast %11 : vector<1x128xf32> to vector<16x128xf32>
    %13 = arith.addf %10, %12 : vector<16x128xf32>
    %cst_11 = arith.constant dense<0xFF800000> : vector<16xf32>
    %14 = vector.multi_reduction <maximumf>, %13, %cst_11 [1] : vector<16x128xf32> to vector<16xf32>
    %15 = vector.shape_cast %14 : vector<16xf32> to vector<16x1xf32>
    %16 = vector.broadcast %15 : vector<16x1xf32> to vector<16x128xf32>
    %17 = arith.subf %13, %16 : vector<16x128xf32>
    %18 = math.exp %17 : vector<16x128xf32>
    %cst_12 = arith.constant dense<0.000000e+00> : vector<16xf32>
    %19 = vector.multi_reduction <add>, %18, %cst_12 [1] : vector<16x128xf32> to vector<16xf32>
    %20 = vector.shape_cast %19 : vector<16xf32> to vector<16x1xf32>
    %21 = vector.broadcast %20 : vector<16x1xf32> to vector<16x128xf32>
    %22 = arith.divf %18, %21 : vector<16x128xf32>
    %c0_13 = arith.constant 0 : index
    %c0_14 = arith.constant 0 : index
    %23 = vector.load %arg6[%c0_13, %c0_14] : memref<16x128xf32, #tpu.memory_space<vmem>>, vector<16x128xf32>
    tpu.vector_store %arg6[%c0_13, %c0_14], %22 {strides = array<i32>} : memref<16x128xf32, #tpu.memory_space<vmem>>, vector<16x128xf32>,
    return
  }
  func.func @transform_0(%arg0: i32) -> (i32, i32) {
    %c0_i32 = arith.constant 0 : i32
    %c0_i32_0 = arith.constant 0 : i32
    return %arg0, %c0_i32 : i32, i32
  }
  func.func @transform_1(%arg0: i32) -> (i32, i32) {
    %c0_i32 = arith.constant 0 : i32
    %c0_i32_0 = arith.constant 0 : i32
    %c0_i32_1 = arith.constant 0 : i32
    return %c0_i32, %c0_i32_0 : i32, i32
  }
  func.func @transform_2(%arg0: i32) -> (i32, i32) {
    %c0_i32 = arith.constant 0 : i32
    %c0_i32_0 = arith.constant 0 : i32
    %c0_i32_1 = arith.constant 0 : i32
    return %c0_i32, %c0_i32_0 : i32, i32
  }
  func.func @transform_3(%arg0: i32) -> (i32, i32) {
    %c0_i32 = arith.constant 0 : i32
    %c0_i32_0 = arith.constant 0 : i32
    %c0_i32_1 = arith.constant 0 : i32
    return %c0_i32, %c0_i32_0 : i32, i32
  }
  func.func @transform_4(%arg0: i32) -> (i32, i32) {
    %c0_i32 = arith.constant 0 : i32
    %c0_i32_0 = arith.constant 0 : i32
    %c0_i32_1 = arith.constant 0 : i32
    return %c0_i32, %c0_i32_0 : i32, i32
  }
  func.func @transform_5(%arg0: i32) -> (i32, i32) {
    %c0_i32 = arith.constant 0 : i32
    %c0_i32_0 = arith.constant 0 : i32
    return %arg0, %c0_i32 : i32, i32
  }
}

</mosaic_0001>

<bundles_post_ra>
// kernel: tpu_custom_call.1
= control target key start
LH: loop header
LB: loop body
LE: loop exit
PB: predicated region body
PF: predicated region fallthrough
CT: control target
= control target key end

     0   :  { %10 = vsyncpa [#allocation3], 0  ;;  %s570_s0 = inlined_call_operand.hbm [shape: bf16[16,128], index: 0, kind: input, shape index: {}]   ;;  %s571_s1 = inlined_call_operand.hbm [shape: bf16[128,128], index: 1, kind: input, shape index: {}]   ;;  %s572_s2 = inlined_call_operand.vmem [shape: f32[1,128], index: 2, kind: input, shape index: {}]   ;;  %s573_s3 = inlined_call_operand.hbm [shape: bf16[128,128], index: 3, kind: input, shape index: {}]   ;;  %s574_s4 = inlined_call_operand.vmem [shape: f32[1,128], index: 4, kind: input, shape index: {}]   ;;  %s575_s5 = inlined_call_operand.hbm [shape: f32[16,128], index: 5, kind: output, shape index: {}]  }
   0x1   :  { %11 = vsyncpa [#allocation6], 0 }
   0x2   :  { %12 = vsyncpa [#allocation4], 0  ;;  %s30_s20 = sshll.u32 %s571_s1, 4  ;;  %s514_s21 = smov [#allocation5]   ;;  %s31_s20 = int_to_ptr.hbm [resolvable:$true] %s30_s20 }
   0x3   :  { %s32_s22 = sshll.u32 %s514_s21, 4  ;;  %s17_s25 = sshll.u32 %s570_s0, 4  ;;  %s33_s22 = int_to_ptr.vmem [resolvable:$true] %s32_s22  ;;  %s18_s25 = int_to_ptr.hbm [resolvable:$true] %s17_s25 }
   0x4   :  { %s515_s26 = smov 64   ;;  %s516_s27 = smov 4  }
   0x5   :  { %38 = dma.hbm_to_vmem [thread:$0]  %s31_s20, 1024, %s33_s22, [#allocation6], %s515_s26, %s515_s26, %s516_s27  }
   0x6   :  { %s517_s28 = smov [#allocation2]   ;;  %s45_s7 = sshll.u32 %s573_s3, 4  ;;  %s46_s7 = int_to_ptr.hbm [resolvable:$true] %s45_s7 }
   0x7   :  { %s19_s29 = sshll.u32 %s517_s28, 4  ;;  %s518_s1 = smov [#allocation7]   ;;  %s20_s29 = int_to_ptr.vmem [resolvable:$true] %s19_s29 }
   0x8   :  { %25 = dma.hbm_to_vmem [thread:$0]  %s18_s25, 128, %s20_s29, [#allocation3], %s515_s26, %s515_s26, %s516_s27  }
   0x9   :  { %s47_s8 = sshll.u32 %s518_s1, 4  ;;  %s48_s8 = int_to_ptr.vmem [resolvable:$true] %s47_s8 }
   0xa   :  { %53 = dma.hbm_to_vmem [thread:$0]  %s46_s7, 1024, %s48_s8, [#allocation6], %s515_s26, %s515_s26, %s516_s27  }
   0xb   :  { %508 = dma.done.wait [#allocation3], 128  }
   0xc   :  { %509 = vsyncadd [#allocation3], 4294967168 }
   0xd   :  { %510 = dma.done.wait [#allocation6], 2048  }
   0xe   :  { %511 = vsyncadd [#allocation6], 4294965248  ;;  %v385_v0 = vld [vmem:[#allocation5 + $0x38] sm:$0xff]  ;;  %v384_v1 = vld [vmem:[#allocation5 + $0x30] sm:$0xff]  ;;  %s295_s13 = sshll.u32 %s575_s5, 4  ;;  %s520_s14 = smov 128   ;;  %s296_s13 = int_to_ptr.hbm [resolvable:$true] %s295_s13 }
   0xf   :  { %144 = vmatpush.bf16.msra.mxu0 %v385_v0  ;;  %v393_v2 = vld [vmem:[#allocation7 + $0x38] sm:$0xff]  ;;  %v392_v3 = vld [vmem:[#allocation7 + $0x30] sm:$0xff]  ;;  %v383_v4 = vld [vmem:[#allocation5 + $0x28] sm:$0xff]  ;;  %s521_s15 = smov 8  }
  0x10   :  { %229 = vmatpush.bf16.msra.mxu1 %v393_v2  ;;  %v391_v5 = vld [vmem:[#allocation7 + $0x28] sm:$0xff]  ;;  %v382_v6 = vld [vmem:[#allocation5 + $0x20] sm:$0xff]  ;;  %v381_v8 = vld [vmem:[#allocation5 + $0x18] sm:$0xff] }
  0x11   :  { %v390_v7 = vld [vmem:[#allocation7 + $0x20] sm:$0xff]  ;;  %v380_v9 = vld [vmem:[#allocation5 + $0x10] sm:$0xff]  ;;  %v379_v10 = vld [vmem:[#allocation5 + $0x8] sm:$0xff] }
  0x12   :  { %v378_v11 = vld [vmem:[#allocation5] sm:$0xff]  ;;  %v377_v12 = vld [vmem:[#allocation2] sm:$0xff]  ;;  %v388_v14 = vld [vmem:[#allocation7 + $0x10] sm:$0xff] }
  0x13   :  { %145 = vmatpush.bf16.msra.mxu0 %v384_v1  ;;  %v389_v13 = vld [vmem:[#allocation7 + $0x18] sm:$0xff]  ;;  %v387_v15 = vld [vmem:[#allocation7 + $0x8] sm:$0xff]  ;;  %v386_v16 = vld [vmem:[#allocation7] sm:$0xff] }
  0x14   :  { %230 = vmatpush.bf16.msra.mxu1 %v392_v3  ;;  %v402_v18 = vld [vmem:[%s572_s2] ss:$0 sm:$0xff]  ;;  %s519_s2 = smov [#allocation8]  }
  0x15   :  { %v403_v25 = vld [vmem:[%s574_s4] ss:$0 sm:$0xff]  ;;  %s293_s4 = sshll.u32 %s519_s2, 4  ;;  %s294_s4 = int_to_ptr.vmem [resolvable:$true] %s293_s4 }
  0x17   :  { %146 = vmatpush.bf16.msra.mxu0 %v383_v4 }
  0x18   :  { %231 = vmatpush.bf16.msra.mxu1 %v391_v5 }
  0x1b   :  { %147 = vmatpush.bf16.msra.mxu0 %v382_v6 }
  0x1c   :  { %232 = vmatpush.bf16.msra.mxu1 %v390_v7 }
  0x1f   :  { %148 = vmatpush.bf16.msra.mxu0 %v381_v8 }
  0x20   :  { %233 = vmatpush.bf16.msra.mxu1 %v389_v13 }
  0x23   :  { %149 = vmatpush.bf16.msra.mxu0 %v380_v9 }
  0x24   :  { %234 = vmatpush.bf16.msra.mxu1 %v388_v14 }
  0x27   :  { %150 = vmatpush.bf16.msra.mxu0 %v379_v10 }
  0x28   :  { %235 = vmatpush.bf16.msra.mxu1 %v387_v15 }
  0x2b   :  { %151 = vmatpush.bf16.msra.mxu0 %v378_v11 }
  0x2c   :  { %236 = vmatpush.bf16.msra.mxu1 %v386_v16 }
  0x2e   :  { %152 = vmatmul.bf16.vlgmr.msra.gmra.mxu0 %v377_v12 }
  0xab   :  { %v153_v17 = vpop.f32.mrf.mxu0 }
  0xac   :  { %v154_v19 = vadd.f32 %v402_v18, %v153_v17 }
  0xae   :  { %v158_v22 = vmax.f32 %v154_v19, 0.0 }
  0xb3   :  { %v155_v20 = vpop.f32.mrf.mxu0 }
  0xb4   :  { %v156_v21 = vadd.f32 %v402_v18, %v155_v20 }
  0xb6   :  { %v159_v23 = vmax.f32 %v156_v21, 0.0 }
  0xb8   :  { %v160_v24 = vpack.c.bf16 %v159_v23, %v158_v22 }
  0xba   :  { %237 = vmatmul.bf16.vlgmr.msra.gmra.mxu1 %v160_v24 }
 0x137   :  { %v238_v26 = vpop.f32.mrf.mxu1 }
 0x138   :  { %v239_v27 = vadd.f32 %v403_v25, %v238_v26 }
 0x13a   :  { %243 = vmax.xlane.f32.xlu0 %v239_v27 }
 0x13f   :  { %v240_v28 = vpop.f32.mrf.mxu1 }
 0x140   :  { %v241_v29 = vadd.f32 %v403_v25, %v240_v28 }
 0x142   :  { %245 = vmax.xlane.f32.xlu0 %v241_v29 }
 0x1ad   :  { %v244_v30 = vpop.xlane.xlu0 %243 }
 0x1ae   :  { %v247_v31 = vsub.f32 %v239_v27, %v244_v30 }
 0x1b0   :  { %v249_v32 = vmul.f32 1.442695, %v247_v31 }
 0x1b2   :  { %404 = vpow2.f32 %v249_v32 }
 0x1b5   :  { %v246_v33 = vpop.xlane.xlu0 %245 }
 0x1b6   :  { %v248_v34 = vsub.f32 %v241_v29, %v246_v33 }
 0x1b8   :  { %v405_v35 = vpop.eup %404  ;;  %v251_v36 = vmul.f32 1.442695, %v248_v34 }
 0x1b9   :  { %253 = vadd.xlane.f32.xlu1 %v405_v35 }
 0x1ba   :  { %406 = vpow2.f32 %v251_v36 }
 0x1c0   :  { %v407_v37 = vpop.eup %406 }
 0x1c1   :  { %255 = vadd.xlane.f32.xlu1 %v407_v37 }
 0x22c   :  { %v254_v38 = vpop.xlane.xlu1 %253 }
 0x22d   :  { %408 = vrcp.f32 %v254_v38  ;;  %v268_v43 = vand.u32 2147483648, %v254_v38  ;;  %v266_v45 = vand.u32 2147483647, %v254_v38  ;;  %vm262_vm1 = vweird.f32 %v254_v38 }
 0x22f   :  { %v269_v48 = vor.u32 1.1754944e-38, %v268_v43  ;;  %vm267_vm3 = vcmp.eq.f32.partialorder %v266_v45, 8.507059e+37 }
 0x233   :  { %v409_v39 = vpop.eup %408 }
 0x234   :  { %v258_v40 = vmul.f32 %v409_v39, %v254_v38  ;;  %v256_v41 = vpop.xlane.xlu1 %255  ;;  %vm263_vm0 = vweird.f32 %v409_v39 }
 0x235   :  { %410 = vrcp.f32 %v256_v41  ;;  %vm264_vm2 = vmor %vm262_vm1, %vm263_vm0  ;;  %v283_v54 = vand.u32 2147483648, %v256_v41  ;;  %v281_v56 = vand.u32 2147483647, %v256_v41  ;;  %vm277_vm5 = vweird.f32 %v256_v41 }
 0x236   :  { %v259_v42 = vsub.f32 1.0, %v258_v40 }
 0x237   :  { %v284_v58 = vor.u32 1.1754944e-38, %v283_v54  ;;  %vm282_vm7 = vcmp.eq.f32.partialorder %v281_v56, 8.507059e+37 }
 0x238   :  { %v260_v44 = vmul.f32 %v409_v39, %v259_v42 }
 0x23a   :  { %v261_v46 = vadd.f32 %v409_v39, %v260_v44 }
 0x23b   :  { %v411_v47 = vpop.eup %410 }
 0x23c   :  { %v265_v49 = vsel %vm264_vm2, %v409_v39, %v261_v46  ;;  %v273_v50 = vmul.f32 %v411_v47, %v256_v41  ;;  %vm278_vm4 = vweird.f32 %v411_v47 }
 0x23d   :  { %v270_v51 = vsel %vm267_vm3, %v269_v48, %v265_v49  ;;  %vm279_vm6 = vmor %vm277_vm5, %vm278_vm4 }
 0x23e   :  { %v271_v52 = vmul.f32 %v405_v35, %v270_v51  ;;  %v274_v53 = vsub.f32 1.0, %v273_v50 }
 0x240   :  { %287 = vst [vmem:[#allocation8] sm:$0xff] %v271_v52  ;;  %v275_v55 = vmul.f32 %v411_v47, %v274_v53 }
 0x242   :  { %v276_v57 = vadd.f32 %v411_v47, %v275_v55 }
 0x244   :  { %v280_v59 = vsel %vm279_vm6, %v411_v47, %v276_v57 }
 0x245   :  { %v285_v60 = vsel %vm282_vm7, %v284_v58, %v280_v59 }
 0x246   :  { %v286_v61 = vmul.f32 %v407_v37, %v285_v60 }
 0x248   :  { %288 = vst [vmem:[#allocation8 + $0x8] sm:$0xff] %v286_v61 }
 0x249   :  { %301 = dma.vmem_to_hbm [thread:$0]  %s294_s4, 256, %s296_s13, [#allocation4], %s520_s14, %s520_s14, %s521_s15  }
 0x24a   :  { %512 = dma.done.wait [#allocation4], 256  }
 0x24b   :  { %513 = vsyncadd [#allocation4], 4294967040 }
 0x24c   :  { %306 = vsyncpa [#allocation3], 1 }
 0x24d   :  { %307 = vsyncpa [#allocation6], 1 }
 0x24e   :  { %308 = vsyncpa [#allocation4], 1 }

</bundles_post_ra>
